<compile_context>
chip_gen: v7x
topology: tpu7x:2x2x1
jax: 0.10.0
libtpu: 0.0.40
codegen_flags: <defaults>
</compile_context>

<pallas_src>
import functools

import jax
import jax.numpy as jnp
from jax.experimental import pallas as pl
from jax.experimental.pallas import tpu as pltpu


def _cross_attn_kernel(x_ref, ctx_ref, gw_ref, gb_ref, qwt_ref, qb_ref,
                       kvwt_ref, kvb_ref, owt_ref, ob_ref, o_ref,
                       *, n_head, eps, block_n):
    H = n_head
    _, S, C = x_ref.shape          # block: (B, S, C), channels-last

    gw = gw_ref[...]               # (1, C)
    gb = gb_ref[...]               # (1, C)
    qwt = qwt_ref[...]             # (C, H*C)      (scale pre-folded)
    qb = qb_ref[...]               # (1, H*C)      (scale pre-folded)
    kvwt = kvwt_ref[...]           # (Cctx, 2*H*C) (K-half scale pre-folded)
    kvb = kvb_ref[...]             # (1, 2*H*C)
    ob = ob_ref[...]               # (1, C)

    inv_n = 1.0 / (S * C)

    for b in range(block_n):                       # static unroll over samples in block
        xb = x_ref[b]                              # (S, C)   original input (residual)
        ctxb = ctx_ref[b]                          # (S2, Cctx)

        # ---- GroupNorm(1, C): single-pass stats over the whole (S, C) sample ----
        s1 = jnp.sum(xb)
        s2 = jnp.sum(xb * xb)
        mean = s1 * inv_n
        var = s2 * inv_n - mean * mean
        rstd = jax.lax.rsqrt(var + eps)
        xn = (xb - mean) * rstd * gw + gb          # per-channel affine (lane broadcast)

        # ---- 1x1-conv projections == plain matmuls on the MXU ----
        q = jnp.dot(xn, qwt, preferred_element_type=jnp.float32) + qb        # (S, H*C)
        kv = jnp.dot(ctxb, kvwt, preferred_element_type=jnp.float32) + kvb   # (S2, 2*H*C)

        acc = jnp.zeros((S, C), jnp.float32)       # per-head out-proj accumulator
        for h in range(H):                         # static unroll over heads
            q_h = q[:, h * C:(h + 1) * C]          # (S, C)   already scaled
            k_h = kv[:, h * C:(h + 1) * C]         # (S2, C)  already scaled
            v_h = kv[:, (H + h) * C:(H + h + 1) * C]   # (S2, C)

            # logits[s, t] = sum_c q_h[s, c] * k_h[t, c]   -> (S, S2)
            logits = jax.lax.dot_general(
                q_h, k_h, (((1,), (1,)), ((), ())),
                preferred_element_type=jnp.float32)

            # softmax over context axis; divide moved to EUP reciprocal
            m = jnp.max(logits, axis=-1, keepdims=True)
            e = jnp.exp(logits - m)
            att = e * pl.reciprocal(jnp.sum(e, axis=-1, keepdims=True), approx=True)

            y_h = jnp.dot(att, v_h, preferred_element_type=jnp.float32)      # (S, C)

            # out_proj contribution of this head: y_h @ ow[:, hC:(h+1)C]^T
            acc = acc + jnp.dot(y_h, owt_ref[h * C:(h + 1) * C, :],
                                preferred_element_type=jnp.float32)

        # TODO(synk): nn.Dropout with rate > 0 is not implemented (rate=0 -> identity).
        o_ref[b] = xb + acc + ob


def cross_attention_1d(x, ctx, params, *, n_head, eps=1e-5, samples_per_step=None):
    """x: (N, C, S) f32; ctx: (N, Cctx, S2) f32. Returns (N, C, S)."""
    N, C, S = x.shape
    _, Cctx, S2 = ctx.shape
    H = n_head

    if samples_per_step is None:
        samples_per_step = 2 if (N % 2 == 0 and N >= 2) else 1
    B = samples_per_step
    assert N % B == 0, "samples_per_step must divide the batch"

    scale = jnp.float32(C) ** jnp.float32(-0.25)

    # ---- host-side weight preparation (transpose once, fold attention scale) ----
    gw = params["gn_w"].reshape(1, C).astype(jnp.float32)
    gb = params["gn_b"].reshape(1, C).astype(jnp.float32)

    qwt = params["q_w"].T.astype(jnp.float32) * scale                 # (C, H*C)
    qb = params["q_b"].reshape(1, H * C).astype(jnp.float32) * scale  # (1, H*C)

    k_scale = jnp.concatenate(
        [jnp.full((1, H * C), scale, jnp.float32),
         jnp.ones((1, H * C), jnp.float32)], axis=1)                  # scale K-half only
    kvwt = params["kv_w"].T.astype(jnp.float32) * k_scale             # (Cctx, 2*H*C)
    kvb = params["kv_b"].reshape(1, 2 * H * C).astype(jnp.float32) * k_scale

    owt = params["out_w"].T.astype(jnp.float32)                       # (H*C, C)
    ob = params["out_b"].reshape(1, C).astype(jnp.float32)

    # channels-last activations for the kernel
    x_sl = jnp.transpose(x, (0, 2, 1))       # (N, S, C)
    ctx_sl = jnp.transpose(ctx, (0, 2, 1))   # (N, S2, Cctx)

    kernel = functools.partial(_cross_attn_kernel, n_head=H, eps=eps, block_n=B)

    out_sl = pl.pallas_call(
        kernel,
        out_shape=jax.ShapeDtypeStruct((N, S, C), jnp.float32),
        grid_spec=pl.GridSpec(
            grid=(N // B,),
            in_specs=[
                pl.BlockSpec((B, S, C), lambda g: (g, 0, 0)),         # input samples
                pl.BlockSpec((B, S2, Cctx), lambda g: (g, 0, 0)),     # context samples
                pl.BlockSpec((1, C), lambda g: (0, 0)),               # gn weight
                pl.BlockSpec((1, C), lambda g: (0, 0)),               # gn bias
                pl.BlockSpec((C, H * C), lambda g: (0, 0)),           # q_proj W^T (scaled)
                pl.BlockSpec((1, H * C), lambda g: (0, 0)),           # q_proj b (scaled)
                pl.BlockSpec((Cctx, 2 * H * C), lambda g: (0, 0)),    # kv_proj W^T
                pl.BlockSpec((1, 2 * H * C), lambda g: (0, 0)),       # kv_proj b
                pl.BlockSpec((H * C, C), lambda g: (0, 0)),           # out_proj W^T
                pl.BlockSpec((1, C), lambda g: (0, 0)),               # out_proj b
            ],
            out_specs=pl.BlockSpec((B, S, C), lambda g: (g, 0, 0)),
        ),
        compiler_params=pltpu.CompilerParams(
            dimension_semantics=("parallel",)),
    )(x_sl, ctx_sl, gw, gb, qwt, qb, kvwt, kvb, owt, ob)

    return jnp.transpose(out_sl, (0, 2, 1))  # back to (N, C, S)


def cross_attention_1d_ref(x, ctx, params, *, n_head, eps=1e-5):
    """Pure-JAX reference mirroring the PyTorch forward exactly."""
    N, C, S = x.shape
    _, Cctx, S2 = ctx.shape
    H = n_head
    gw, gb = params["gn_w"], params["gn_b"]
    qw, qb = params["q_w"], params["q_b"]
    kvw, kvb = params["kv_w"], params["kv_b"]
    ow, ob = params["out_w"], params["out_b"]

    mean = x.mean(axis=(1, 2), keepdims=True)
    var = x.var(axis=(1, 2), keepdims=True)
    xn = (x - mean) / jnp.sqrt(var + eps)
    xn = xn * gw[None, :, None] + gb[None, :, None]

    q = jnp.einsum("oi,nis->nos", qw, xn) + qb[None, :, None]        # (N, H*C, S)
    kv = jnp.einsum("oi,nis->nos", kvw, ctx) + kvb[None, :, None]    # (N, 2*H*C, S2)

    q = q.reshape(N, H, C, S).transpose(0, 1, 3, 2)                  # (N, H, S, C)
    kv = kv.reshape(N, 2 * H, C, S2).transpose(0, 1, 3, 2)           # (N, 2H, S2, C)
    k, v = kv[:, :H], kv[:, H:]

    scale = C ** (-0.25)
    att = jnp.einsum("nhsc,nhtc->nhst", q * scale, k * scale)
    att = jax.nn.softmax(att, axis=-1)
    y = jnp.einsum("nhst,nhtc->nhsc", att, v)                        # (N, H, S, C)
    y = y.transpose(0, 1, 3, 2).reshape(N, H * C, S)                 # (N, H*C, S)
    out = jnp.einsum("oi,nis->nos", ow, y) + ob[None, :, None]
    return x + out


if __name__ == "__main__":
    # Small shapes consistent with the module's forward (grid of 2 steps, 2 samples each).
    N, C, Cctx, H, S, S2 = 4, 8, 16, 2, 16, 8

    key = jax.random.PRNGKey(0)
    ks = jax.random.split(key, 10)
    x = jax.random.normal(ks[0], (N, C, S), jnp.float32)
    ctx = jax.random.normal(ks[1], (N, Cctx, S2), jnp.float32)

    # Deterministic synthetic parameters (PyTorch-convention shapes; 1x1 conv
    # kernels stored as (out, in) matrices, biases as vectors).
    params = {
        "gn_w": 1.0 + 0.1 * jax.random.normal(ks[2], (C,), jnp.float32),
        "gn_b": 0.1 * jax.random.normal(ks[3], (C,), jnp.float32),
        "q_w": 0.2 * jax.random.normal(ks[4], (H * C, C), jnp.float32),
        "q_b": 0.1 * jax.random.normal(ks[5], (H * C,), jnp.float32),
        "kv_w": 0.2 * jax.random.normal(ks[6], (2 * H * C, Cctx), jnp.float32),
        "kv_b": 0.1 * jax.random.normal(ks[7], (2 * H * C,), jnp.float32),
        "out_w": 0.2 * jax.random.normal(ks[8], (C, H * C), jnp.float32),
        "out_b": 0.1 * jax.random.normal(ks[9], (C,), jnp.float32),
    }

    out = cross_attention_1d(x, ctx, params, n_head=H)
    out = jax.block_until_ready(out)

    ref = cross_attention_1d_ref(x, ctx, params, n_head=H)
    assert out.shape == (N, C, S)
    max_err = float(jnp.max(jnp.abs(out - ref)))
    # Tolerance accounts for single-pass variance + approx EUP reciprocal + per-head
    # accumulation order; real bugs produce errors orders of magnitude larger.
    assert jnp.allclose(out, ref, rtol=2e-3, atol=2e-3), (
        f"mismatch vs pure-JAX reference (max abs err {max_err})")

    print("KERNEL_OK")
</pallas_src>

<mosaic_0001>
module attributes {stable_mosaic.version = 11 : i64} {
  func.func @_cross_attn_kernel(%arg0: i32, %arg1: memref<2x16x8xf32, #tpu.memory_space<vmem>>, %arg2: memref<2x8x16xf32, #tpu.memory_space<vmem>>, %arg3: memref<1x8xf32, #tpu.memory_space<vmem>>, %arg4: memref<1x8xf32, #tpu.memory_space<vmem>>, %arg5: memref<8x16xf32, #tpu.memory_space<vmem>>, %arg6: memref<1x16xf32, #tpu.memory_space<vmem>>, %arg7: memref<16x32xf32, #tpu.memory_space<vmem>>, %arg8: memref<1x32xf32, #tpu.memory_space<vmem>>, %arg9: memref<16x8xf32, #tpu.memory_space<vmem>>, %arg10: memref<1x8xf32, #tpu.memory_space<vmem>>, %arg11: memref<2x16x8xf32, #tpu.memory_space<vmem>>) attributes {dimension_semantics = [#tpu.dimension_semantics<parallel>], iteration_bounds = array<i64: 2>, scalar_prefetch = 0 : i64, scratch_operands = 0 : i64, tpu.core_type = #tpu.core_type<tc>, window_params = [{transform_indices = @transform_0, window_bounds = array<i64: 2, 16, 8>}, {transform_indices = @transform_1, window_bounds = array<i64: 2, 8, 16>}, {pipeline_mode = #tpu.pipeline_mode<synchronous>, transform_indices = @transform_2, window_bounds = array<i64: 1, 8>}, {pipeline_mode = #tpu.pipeline_mode<synchronous>, transform_indices = @transform_3, window_bounds = array<i64: 1, 8>}, {pipeline_mode = #tpu.pipeline_mode<synchronous>, transform_indices = @transform_4, window_bounds = array<i64: 8, 16>}, {pipeline_mode = #tpu.pipeline_mode<synchronous>, transform_indices = @transform_5, window_bounds = array<i64: 1, 16>}, {pipeline_mode = #tpu.pipeline_mode<synchronous>, transform_indices = @transform_6, window_bounds = array<i64: 16, 32>}, {pipeline_mode = #tpu.pipeline_mode<synchronous>, transform_indices = @transform_7, window_bounds = array<i64: 1, 32>}, {pipeline_mode = #tpu.pipeline_mode<synchronous>, transform_indices = @transform_8, window_bounds = array<i64: 16, 8>}, {pipeline_mode = #tpu.pipeline_mode<synchronous>, transform_indices = @transform_9, window_bounds = array<i64: 1, 8>}, {transform_indices = @transform_10, window_bounds = array<i64: 2, 16, 8>}]} {
    %c0 = arith.constant 0 : index
    %c0_0 = arith.constant 0 : index
    %0 = vector.load %arg3[%c0, %c0_0] : memref<1x8xf32, #tpu.memory_space<vmem>>, vector<1x8xf32>
    %c0_1 = arith.constant 0 : index
    %c0_2 = arith.constant 0 : index
    %1 = vector.load %arg4[%c0_1, %c0_2] : memref<1x8xf32, #tpu.memory_space<vmem>>, vector<1x8xf32>
    %c0_3 = arith.constant 0 : index
    %c0_4 = arith.constant 0 : index
    %2 = vector.load %arg5[%c0_3, %c0_4] : memref<8x16xf32, #tpu.memory_space<vmem>>, vector<8x16xf32>
    %c0_5 = arith.constant 0 : index
    %c0_6 = arith.constant 0 : index
    %3 = vector.load %arg6[%c0_5, %c0_6] : memref<1x16xf32, #tpu.memory_space<vmem>>, vector<1x16xf32>
    %c0_7 = arith.constant 0 : index
    %c0_8 = arith.constant 0 : index
    %4 = vector.load %arg7[%c0_7, %c0_8] : memref<16x32xf32, #tpu.memory_space<vmem>>, vector<16x32xf32>
    %c0_9 = arith.constant 0 : index
    %c0_10 = arith.constant 0 : index
    %5 = vector.load %arg8[%c0_9, %c0_10] : memref<1x32xf32, #tpu.memory_space<vmem>>, vector<1x32xf32>
    %c0_11 = arith.constant 0 : index
    %c0_12 = arith.constant 0 : index
    %6 = vector.load %arg10[%c0_11, %c0_12] : memref<1x8xf32, #tpu.memory_space<vmem>>, vector<1x8xf32>
    %c0_13 = arith.constant 0 : index
    %c0_14 = arith.constant 0 : index
    %c0_15 = arith.constant 0 : index
    %7 = vector.load %arg1[%c0_13, %c0_14, %c0_15] : memref<2x16x8xf32, #tpu.memory_space<vmem>>, vector<1x16x8xf32>
    %8 = vector.shape_cast %7 : vector<1x16x8xf32> to vector<16x8xf32>
    %c0_16 = arith.constant 0 : index
    %c0_17 = arith.constant 0 : index
    %c0_18 = arith.constant 0 : index
    %9 = vector.load %arg2[%c0_16, %c0_17, %c0_18] : memref<2x8x16xf32, #tpu.memory_space<vmem>>, vector<1x8x16xf32>
    %10 = vector.shape_cast %9 : vector<1x8x16xf32> to vector<8x16xf32>
    %11 = vector.shape_cast %8 : vector<16x8xf32> to vector<1x16x8xf32>
    %cst = arith.constant dense<0.000000e+00> : vector<1xf32>
    %12 = vector.multi_reduction <add>, %11, %cst [1, 2] : vector<1x16x8xf32> to vector<1xf32>
    %13 = vector.shape_cast %12 : vector<1xf32> to vector<1x1x1xf32>
    %14 = vector.extract %13[0, 0, 0] : f32 from vector<1x1x1xf32>
    %15 = arith.mulf %8, %8 : vector<16x8xf32>
    %16 = vector.shape_cast %15 : vector<16x8xf32> to vector<1x16x8xf32>
    %cst_19 = arith.constant dense<0.000000e+00> : vector<1xf32>
    %17 = vector.multi_reduction <add>, %16, %cst_19 [1, 2] : vector<1x16x8xf32> to vector<1xf32>
    %18 = vector.shape_cast %17 : vector<1xf32> to vector<1x1x1xf32>
    %19 = vector.extract %18[0, 0, 0] : f32 from vector<1x1x1xf32>
    %cst_20 = arith.constant 7.812500e-03 : f32
    %20 = arith.mulf %14, %cst_20 : f32
    %cst_21 = arith.constant 7.812500e-03 : f32
    %21 = arith.mulf %19, %cst_21 : f32
    %22 = arith.mulf %20, %20 : f32
    %23 = arith.subf %21, %22 : f32
    %cst_22 = arith.constant 9.99999974E-6 : f32
    %24 = arith.addf %23, %cst_22 : f32
    %25 = math.rsqrt %24 : f32
    %26 = vector.broadcast %20 : f32 to vector<16x8xf32>
    %27 = arith.subf %8, %26 : vector<16x8xf32>
    %28 = vector.broadcast %25 : f32 to vector<16x8xf32>
    %29 = arith.mulf %27, %28 : vector<16x8xf32>
    %30 = vector.broadcast %0 : vector<1x8xf32> to vector<16x8xf32>
    %31 = arith.mulf %29, %30 : vector<16x8xf32>
    %32 = vector.broadcast %1 : vector<1x8xf32> to vector<16x8xf32>
    %33 = arith.addf %31, %32 : vector<16x8xf32>
    %cst_23 = arith.constant dense<0.000000e+00> : vector<16x16xf32>
    %34 = tpu.matmul %33, %2, %cst_23 {dimension_numbers = #tpu.dot_dimension_numbers<[1], [0], [0], [1], [0, 0, 1, 1], [], []>} : vector<16x8xf32>, vector<8x16xf32>, vector<16x16xf32> -> vector<16x16xf32>
    %35 = vector.broadcast %3 : vector<1x16xf32> to vector<16x16xf32>
    %36 = arith.addf %34, %35 : vector<16x16xf32>
    %cst_24 = arith.constant dense<0.000000e+00> : vector<8x32xf32>
    %37 = tpu.matmul %10, %4, %cst_24 {dimension_numbers = #tpu.dot_dimension_numbers<[1], [0], [0], [1], [0, 0, 1, 1], [], []>} : vector<8x16xf32>, vector<16x32xf32>, vector<8x32xf32> -> vector<8x32xf32>
    %38 = vector.broadcast %5 : vector<1x32xf32> to vector<8x32xf32>
    %39 = arith.addf %37, %38 : vector<8x32xf32>
    %cst_25 = arith.constant 0.000000e+00 : f32
    %40 = vector.broadcast %cst_25 : f32 to vector<16x8xf32>
    %41 = vector.extract_strided_slice %36 {offsets = [0, 0], sizes = [16, 8], strides = [1, 1]} : vector<16x16xf32> to vector<16x8xf32>
    %42 = vector.extract_strided_slice %39 {offsets = [0, 0], sizes = [8, 8], strides = [1, 1]} : vector<8x32xf32> to vector<8x8xf32>
    %43 = vector.extract_strided_slice %39 {offsets = [0, 16], sizes = [8, 8], strides = [1, 1]} : vector<8x32xf32> to vector<8x8xf32>
    %cst_26 = arith.constant dense<0.000000e+00> : vector<16x8xf32>
    %44 = tpu.matmul %41, %42, %cst_26 {dimension_numbers = #tpu.dot_dimension_numbers<[1], [1], [0], [0], [0, 0, 1, 0], [], []>} : vector<16x8xf32>, vector<8x8xf32>, vector<16x8xf32> -> vector<16x8xf32>
    %cst_27 = arith.constant dense<0xFF800000> : vector<16xf32>
    %45 = vector.multi_reduction <maximumf>, %44, %cst_27 [1] : vector<16x8xf32> to vector<16xf32>
    %46 = vector.shape_cast %45 : vector<16xf32> to vector<16x1xf32>
    %47 = vector.broadcast %46 : vector<16x1xf32> to vector<16x8xf32>
    %48 = arith.subf %44, %47 : vector<16x8xf32>
    %49 = math.exp %48 : vector<16x8xf32>
    %cst_28 = arith.constant dense<0.000000e+00> : vector<16xf32>
    %50 = vector.multi_reduction <add>, %49, %cst_28 [1] : vector<16x8xf32> to vector<16xf32>
    %51 = vector.shape_cast %50 : vector<16xf32> to vector<16x1xf32>
    %52 = tpu.reciprocal %51 {approx = true} : vector<16x1xf32> -> vector<16x1xf32>
    %53 = vector.broadcast %52 : vector<16x1xf32> to vector<16x8xf32>
    %54 = arith.mulf %49, %53 : vector<16x8xf32>
    %cst_29 = arith.constant dense<0.000000e+00> : vector<16x8xf32>
    %55 = tpu.matmul %54, %43, %cst_29 {dimension_numbers = #tpu.dot_dimension_numbers<[1], [0], [0], [1], [0, 0, 1, 1], [], []>} : vector<16x8xf32>, vector<8x8xf32>, vector<16x8xf32> -> vector<16x8xf32>
    %c0_30 = arith.constant 0 : index
    %c0_31 = arith.constant 0 : index
    %56 = vector.load %arg9[%c0_30, %c0_31] : memref<16x8xf32, #tpu.memory_space<vmem>>, vector<8x8xf32>
    %cst_32 = arith.constant dense<0.000000e+00> : vector<16x8xf32>
    %57 = tpu.matmul %55, %56, %cst_32 {dimension_numbers = #tpu.dot_dimension_numbers<[1], [0], [0], [1], [0, 0, 1, 1], [], []>} : vector<16x8xf32>, vector<8x8xf32>, vector<16x8xf32> -> vector<16x8xf32>
    %58 = arith.addf %40, %57 : vector<16x8xf32>
    %59 = vector.extract_strided_slice %36 {offsets = [0, 8], sizes = [16, 8], strides = [1, 1]} : vector<16x16xf32> to vector<16x8xf32>
    %60 = vector.extract_strided_slice %39 {offsets = [0, 8], sizes = [8, 8], strides = [1, 1]} : vector<8x32xf32> to vector<8x8xf32>
    %61 = vector.extract_strided_slice %39 {offsets = [0, 24], sizes = [8, 8], strides = [1, 1]} : vector<8x32xf32> to vector<8x8xf32>
    %cst_33 = arith.constant dense<0.000000e+00> : vector<16x8xf32>
    %62 = tpu.matmul %59, %60, %cst_33 {dimension_numbers = #tpu.dot_dimension_numbers<[1], [1], [0], [0], [0, 0, 1, 0], [], []>} : vector<16x8xf32>, vector<8x8xf32>, vector<16x8xf32> -> vector<16x8xf32>
    %cst_34 = arith.constant dense<0xFF800000> : vector<16xf32>
    %63 = vector.multi_reduction <maximumf>, %62, %cst_34 [1] : vector<16x8xf32> to vector<16xf32>
    %64 = vector.shape_cast %63 : vector<16xf32> to vector<16x1xf32>
    %65 = vector.broadcast %64 : vector<16x1xf32> to vector<16x8xf32>
    %66 = arith.subf %62, %65 : vector<16x8xf32>
    %67 = math.exp %66 : vector<16x8xf32>
    %cst_35 = arith.constant dense<0.000000e+00> : vector<16xf32>
    %68 = vector.multi_reduction <add>, %67, %cst_35 [1] : vector<16x8xf32> to vector<16xf32>
    %69 = vector.shape_cast %68 : vector<16xf32> to vector<16x1xf32>
    %70 = tpu.reciprocal %69 {approx = true} : vector<16x1xf32> -> vector<16x1xf32>
    %71 = vector.broadcast %70 : vector<16x1xf32> to vector<16x8xf32>
    %72 = arith.mulf %67, %71 : vector<16x8xf32>
    %cst_36 = arith.constant dense<0.000000e+00> : vector<16x8xf32>
    %73 = tpu.matmul %72, %61, %cst_36 {dimension_numbers = #tpu.dot_dimension_numbers<[1], [0], [0], [1], [0, 0, 1, 1], [], []>} : vector<16x8xf32>, vector<8x8xf32>, vector<16x8xf32> -> vector<16x8xf32>
    %c8 = arith.constant 8 : index
    %c0_37 = arith.constant 0 : index
    %74 = vector.load %arg9[%c8, %c0_37] : memref<16x8xf32, #tpu.memory_space<vmem>>, vector<8x8xf32>
    %cst_38 = arith.constant dense<0.000000e+00> : vector<16x8xf32>
    %75 = tpu.matmul %73, %74, %cst_38 {dimension_numbers = #tpu.dot_dimension_numbers<[1], [0], [0], [1], [0, 0, 1, 1], [], []>} : vector<16x8xf32>, vector<8x8xf32>, vector<16x8xf32> -> vector<16x8xf32>
    %76 = arith.addf %58, %75 : vector<16x8xf32>
    %77 = arith.addf %8, %76 : vector<16x8xf32>
    %78 = vector.broadcast %6 : vector<1x8xf32> to vector<16x8xf32>
    %79 = arith.addf %77, %78 : vector<16x8xf32>
    %c0_39 = arith.constant 0 : index
    %c0_40 = arith.constant 0 : index
    %c0_41 = arith.constant 0 : index
    %80 = vector.load %arg11[%c0_39, %c0_40, %c0_41] : memref<2x16x8xf32, #tpu.memory_space<vmem>>, vector<1x16x8xf32>
    %81 = vector.shape_cast %80 : vector<1x16x8xf32> to vector<16x8xf32>
    %82 = vector.shape_cast %79 : vector<16x8xf32> to vector<1x16x8xf32>
    tpu.vector_store %arg11[%c0_39, %c0_40, %c0_41], %82 {strides = array<i32>} : memref<2x16x8xf32, #tpu.memory_space<vmem>>, vector<1x16x8xf32>,
    %c1 = arith.constant 1 : index
    %c0_42 = arith.constant 0 : index
    %c0_43 = arith.constant 0 : index
    %83 = vector.load %arg1[%c1, %c0_42, %c0_43] : memref<2x16x8xf32, #tpu.memory_space<vmem>>, vector<1x16x8xf32>
    %84 = vector.shape_cast %83 : vector<1x16x8xf32> to vector<16x8xf32>
    %c1_44 = arith.constant 1 : index
    %c0_45 = arith.constant 0 : index
    %c0_46 = arith.constant 0 : index
    %85 = vector.load %arg2[%c1_44, %c0_45, %c0_46] : memref<2x8x16xf32, #tpu.memory_space<vmem>>, vector<1x8x16xf32>
    %86 = vector.shape_cast %85 : vector<1x8x16xf32> to vector<8x16xf32>
    %87 = vector.shape_cast %84 : vector<16x8xf32> to vector<1x16x8xf32>
    %cst_47 = arith.constant dense<0.000000e+00> : vector<1xf32>
    %88 = vector.multi_reduction <add>, %87, %cst_47 [1, 2] : vector<1x16x8xf32> to vector<1xf32>
    %89 = vector.shape_cast %88 : vector<1xf32> to vector<1x1x1xf32>
    %90 = vector.extract %89[0, 0, 0] : f32 from vector<1x1x1xf32>
    %91 = arith.mulf %84, %84 : vector<16x8xf32>
    %92 = vector.shape_cast %91 : vector<16x8xf32> to vector<1x16x8xf32>
    %cst_48 = arith.constant dense<0.000000e+00> : vector<1xf32>
    %93 = vector.multi_reduction <add>, %92, %cst_48 [1, 2] : vector<1x16x8xf32> to vector<1xf32>
    %94 = vector.shape_cast %93 : vector<1xf32> to vector<1x1x1xf32>
    %95 = vector.extract %94[0, 0, 0] : f32 from vector<1x1x1xf32>
    %cst_49 = arith.constant 7.812500e-03 : f32
    %96 = arith.mulf %90, %cst_49 : f32
    %cst_50 = arith.constant 7.812500e-03 : f32
    %97 = arith.mulf %95, %cst_50 : f32
    %98 = arith.mulf %96, %96 : f32
    %99 = arith.subf %97, %98 : f32
    %cst_51 = arith.constant 9.99999974E-6 : f32
    %100 = arith.addf %99, %cst_51 : f32
    %101 = math.rsqrt %100 : f32
    %102 = vector.broadcast %96 : f32 to vector<16x8xf32>
    %103 = arith.subf %84, %102 : vector<16x8xf32>
    %104 = vector.broadcast %101 : f32 to vector<16x8xf32>
    %105 = arith.mulf %103, %104 : vector<16x8xf32>
    %106 = vector.broadcast %0 : vector<1x8xf32> to vector<16x8xf32>
    %107 = arith.mulf %105, %106 : vector<16x8xf32>
    %108 = vector.broadcast %1 : vector<1x8xf32> to vector<16x8xf32>
    %109 = arith.addf %107, %108 : vector<16x8xf32>
    %cst_52 = arith.constant dense<0.000000e+00> : vector<16x16xf32>
    %110 = tpu.matmul %109, %2, %cst_52 {dimension_numbers = #tpu.dot_dimension_numbers<[1], [0], [0], [1], [0, 0, 1, 1], [], []>} : vector<16x8xf32>, vector<8x16xf32>, vector<16x16xf32> -> vector<16x16xf32>
    %111 = vector.broadcast %3 : vector<1x16xf32> to vector<16x16xf32>
    %112 = arith.addf %110, %111 : vector<16x16xf32>
    %cst_53 = arith.constant dense<0.000000e+00> : vector<8x32xf32>
    %113 = tpu.matmul %86, %4, %cst_53 {dimension_numbers = #tpu.dot_dimension_numbers<[1], [0], [0], [1], [0, 0, 1, 1], [], []>} : vector<8x16xf32>, vector<16x32xf32>, vector<8x32xf32> -> vector<8x32xf32>
    %114 = vector.broadcast %5 : vector<1x32xf32> to vector<8x32xf32>
    %115 = arith.addf %113, %114 : vector<8x32xf32>
    %cst_54 = arith.constant 0.000000e+00 : f32
    %116 = vector.broadcast %cst_54 : f32 to vector<16x8xf32>
    %117 = vector.extract_strided_slice %112 {offsets = [0, 0], sizes = [16, 8], strides = [1, 1]} : vector<16x16xf32> to vector<16x8xf32>
    %118 = vector.extract_strided_slice %115 {offsets = [0, 0], sizes = [8, 8], strides = [1, 1]} : vector<8x32xf32> to vector<8x8xf32>
    %119 = vector.extract_strided_slice %115 {offsets = [0, 16], sizes = [8, 8], strides = [1, 1]} : vector<8x32xf32> to vector<8x8xf32>
    %cst_55 = arith.constant dense<0.000000e+00> : vector<16x8xf32>
    %120 = tpu.matmul %117, %118, %cst_55 {dimension_numbers = #tpu.dot_dimension_numbers<[1], [1], [0], [0], [0, 0, 1, 0], [], []>} : vector<16x8xf32>, vector<8x8xf32>, vector<16x8xf32> -> vector<16x8xf32>
    %cst_56 = arith.constant dense<0xFF800000> : vector<16xf32>
    %121 = vector.multi_reduction <maximumf>, %120, %cst_56 [1] : vector<16x8xf32> to vector<16xf32>
    %122 = vector.shape_cast %121 : vector<16xf32> to vector<16x1xf32>
    %123 = vector.broadcast %122 : vector<16x1xf32> to vector<16x8xf32>
    %124 = arith.subf %120, %123 : vector<16x8xf32>
    %125 = math.exp %124 : vector<16x8xf32>
    %cst_57 = arith.constant dense<0.000000e+00> : vector<16xf32>
    %126 = vector.multi_reduction <add>, %125, %cst_57 [1] : vector<16x8xf32> to vector<16xf32>
    %127 = vector.shape_cast %126 : vector<16xf32> to vector<16x1xf32>
    %128 = tpu.reciprocal %127 {approx = true} : vector<16x1xf32> -> vector<16x1xf32>
    %129 = vector.broadcast %128 : vector<16x1xf32> to vector<16x8xf32>
    %130 = arith.mulf %125, %129 : vector<16x8xf32>
    %cst_58 = arith.constant dense<0.000000e+00> : vector<16x8xf32>
    %131 = tpu.matmul %130, %119, %cst_58 {dimension_numbers = #tpu.dot_dimension_numbers<[1], [0], [0], [1], [0, 0, 1, 1], [], []>} : vector<16x8xf32>, vector<8x8xf32>, vector<16x8xf32> -> vector<16x8xf32>
    %c0_59 = arith.constant 0 : index
    %c0_60 = arith.constant 0 : index
    %132 = vector.load %arg9[%c0_59, %c0_60] : memref<16x8xf32, #tpu.memory_space<vmem>>, vector<8x8xf32>
    %cst_61 = arith.constant dense<0.000000e+00> : vector<16x8xf32>
    %133 = tpu.matmul %131, %132, %cst_61 {dimension_numbers = #tpu.dot_dimension_numbers<[1], [0], [0], [1], [0, 0, 1, 1], [], []>} : vector<16x8xf32>, vector<8x8xf32>, vector<16x8xf32> -> vector<16x8xf32>
    %134 = arith.addf %116, %133 : vector<16x8xf32>
    %135 = vector.extract_strided_slice %112 {offsets = [0, 8], sizes = [16, 8], strides = [1, 1]} : vector<16x16xf32> to vector<16x8xf32>
    %136 = vector.extract_strided_slice %115 {offsets = [0, 8], sizes = [8, 8], strides = [1, 1]} : vector<8x32xf32> to vector<8x8xf32>
    %137 = vector.extract_strided_slice %115 {offsets = [0, 24], sizes = [8, 8], strides = [1, 1]} : vector<8x32xf32> to vector<8x8xf32>
    %cst_62 = arith.constant dense<0.000000e+00> : vector<16x8xf32>
    %138 = tpu.matmul %135, %136, %cst_62 {dimension_numbers = #tpu.dot_dimension_numbers<[1], [1], [0], [0], [0, 0, 1, 0], [], []>} : vector<16x8xf32>, vector<8x8xf32>, vector<16x8xf32> -> vector<16x8xf32>
    %cst_63 = arith.constant dense<0xFF800000> : vector<16xf32>
    %139 = vector.multi_reduction <maximumf>, %138, %cst_63 [1] : vector<16x8xf32> to vector<16xf32>
    %140 = vector.shape_cast %139 : vector<16xf32> to vector<16x1xf32>
    %141 = vector.broadcast %140 : vector<16x1xf32> to vector<16x8xf32>
    %142 = arith.subf %138, %141 : vector<16x8xf32>
    %143 = math.exp %142 : vector<16x8xf32>
    %cst_64 = arith.constant dense<0.000000e+00> : vector<16xf32>
    %144 = vector.multi_reduction <add>, %143, %cst_64 [1] : vector<16x8xf32> to vector<16xf32>
    %145 = vector.shape_cast %144 : vector<16xf32> to vector<16x1xf32>
    %146 = tpu.reciprocal %145 {approx = true} : vector<16x1xf32> -> vector<16x1xf32>
    %147 = vector.broadcast %146 : vector<16x1xf32> to vector<16x8xf32>
    %148 = arith.mulf %143, %147 : vector<16x8xf32>
    %cst_65 = arith.constant dense<0.000000e+00> : vector<16x8xf32>
    %149 = tpu.matmul %148, %137, %cst_65 {dimension_numbers = #tpu.dot_dimension_numbers<[1], [0], [0], [1], [0, 0, 1, 1], [], []>} : vector<16x8xf32>, vector<8x8xf32>, vector<16x8xf32> -> vector<16x8xf32>
    %c8_66 = arith.constant 8 : index
    %c0_67 = arith.constant 0 : index
    %150 = vector.load %arg9[%c8_66, %c0_67] : memref<16x8xf32, #tpu.memory_space<vmem>>, vector<8x8xf32>
    %cst_68 = arith.constant dense<0.000000e+00> : vector<16x8xf32>
    %151 = tpu.matmul %149, %150, %cst_68 {dimension_numbers = #tpu.dot_dimension_numbers<[1], [0], [0], [1], [0, 0, 1, 1], [], []>} : vector<16x8xf32>, vector<8x8xf32>, vector<16x8xf32> -> vector<16x8xf32>
    %152 = arith.addf %134, %151 : vector<16x8xf32>
    %153 = arith.addf %84, %152 : vector<16x8xf32>
    %154 = vector.broadcast %6 : vector<1x8xf32> to vector<16x8xf32>
    %155 = arith.addf %153, %154 : vector<16x8xf32>
    %c1_69 = arith.constant 1 : index
    %c0_70 = arith.constant 0 : index
    %c0_71 = arith.constant 0 : index
    %156 = vector.load %arg11[%c1_69, %c0_70, %c0_71] : memref<2x16x8xf32, #tpu.memory_space<vmem>>, vector<1x16x8xf32>
    %157 = vector.shape_cast %156 : vector<1x16x8xf32> to vector<16x8xf32>
    %158 = vector.shape_cast %155 : vector<16x8xf32> to vector<1x16x8xf32>
    tpu.vector_store %arg11[%c1_69, %c0_70, %c0_71], %158 {strides = array<i32>} : memref<2x16x8xf32, #tpu.memory_space<vmem>>, vector<1x16x8xf32>,
    return
  }
  func.func @transform_0(%arg0: i32) -> (i32, i32, i32) {
    %c0_i32 = arith.constant 0 : i32
    %c0_i32_0 = arith.constant 0 : i32
    %c0_i32_1 = arith.constant 0 : i32
    return %arg0, %c0_i32, %c0_i32_0 : i32, i32, i32
  }
  func.func @transform_1(%arg0: i32) -> (i32, i32, i32) {
    %c0_i32 = arith.constant 0 : i32
    %c0_i32_0 = arith.constant 0 : i32
    %c0_i32_1 = arith.constant 0 : i32
    return %arg0, %c0_i32, %c0_i32_0 : i32, i32, i32
  }
  func.func @transform_2(%arg0: i32) -> (i32, i32) {
    %c0_i32 = arith.constant 0 : i32
    %c0_i32_0 = arith.constant 0 : i32
    %c0_i32_1 = arith.constant 0 : i32
    return %c0_i32, %c0_i32_0 : i32, i32
  }
  func.func @transform_3(%arg0: i32) -> (i32, i32) {
    %c0_i32 = arith.constant 0 : i32
    %c0_i32_0 = arith.constant 0 : i32
    %c0_i32_1 = arith.constant 0 : i32
    return %c0_i32, %c0_i32_0 : i32, i32
  }
  func.func @transform_4(%arg0: i32) -> (i32, i32) {
    %c0_i32 = arith.constant 0 : i32
    %c0_i32_0 = arith.constant 0 : i32
    %c0_i32_1 = arith.constant 0 : i32
    return %c0_i32, %c0_i32_0 : i32, i32
  }
  func.func @transform_5(%arg0: i32) -> (i32, i32) {
    %c0_i32 = arith.constant 0 : i32
    %c0_i32_0 = arith.constant 0 : i32
    %c0_i32_1 = arith.constant 0 : i32
    return %c0_i32, %c0_i32_0 : i32, i32
  }
  func.func @transform_6(%arg0: i32) -> (i32, i32) {
    %c0_i32 = arith.constant 0 : i32
    %c0_i32_0 = arith.constant 0 : i32
    %c0_i32_1 = arith.constant 0 : i32
    return %c0_i32, %c0_i32_0 : i32, i32
  }
  func.func @transform_7(%arg0: i32) -> (i32, i32) {
    %c0_i32 = arith.constant 0 : i32
    %c0_i32_0 = arith.constant 0 : i32
    %c0_i32_1 = arith.constant 0 : i32
    return %c0_i32, %c0_i32_0 : i32, i32
  }
  func.func @transform_8(%arg0: i32) -> (i32, i32) {
    %c0_i32 = arith.constant 0 : i32
    %c0_i32_0 = arith.constant 0 : i32
    %c0_i32_1 = arith.constant 0 : i32
    return %c0_i32, %c0_i32_0 : i32, i32
  }
  func.func @transform_9(%arg0: i32) -> (i32, i32) {
    %c0_i32 = arith.constant 0 : i32
    %c0_i32_0 = arith.constant 0 : i32
    %c0_i32_1 = arith.constant 0 : i32
    return %c0_i32, %c0_i32_0 : i32, i32
  }
  func.func @transform_10(%arg0: i32) -> (i32, i32, i32) {
    %c0_i32 = arith.constant 0 : i32
    %c0_i32_0 = arith.constant 0 : i32
    %c0_i32_1 = arith.constant 0 : i32
    return %arg0, %c0_i32, %c0_i32_0 : i32, i32, i32
  }
}

</mosaic_0001>

<bundles_post_ra>
// kernel: tpu_custom_call.1
= control target key start
LH: loop header
LB: loop body
LE: loop exit
PB: predicated region body
PF: predicated region fallthrough
CT: control target
= control target key end

     0   :  { %s2345_s13 = smov 0   ;;  %s2592_s0 = inlined_call_operand.vmem [shape: f32[4,16,8], index: 0, kind: input, shape index: {}]   ;;  %s2593_s1 = inlined_call_operand.vmem [shape: f32[4,8,16], index: 1, kind: input, shape index: {}]   ;;  %s2594_s2 = inlined_call_operand.vmem [shape: f32[1,8], index: 2, kind: input, shape index: {}]   ;;  %s2595_s3 = inlined_call_operand.vmem [shape: f32[1,8], index: 3, kind: input, shape index: {}]   ;;  %s2596_s4 = inlined_call_operand.vmem [shape: f32[8,16], index: 4, kind: input, shape index: {}]   ;;  %s2597_s5 = inlined_call_operand.vmem [shape: f32[1,16], index: 5, kind: input, shape index: {}]   ;;  %s2598_s6 = inlined_call_operand.vmem [shape: f32[16,32], index: 6, kind: input, shape index: {}]   ;;  %s2599_s7 = inlined_call_operand.vmem [shape: f32[1,32], index: 7, kind: input, shape index: {}]   ;;  %s2600_s8 = inlined_call_operand.vmem [shape: f32[16,8], index: 8, kind: input, shape index: {}]   ;;  %s2601_s9 = inlined_call_operand.vmem [shape: f32[1,8], index: 9, kind: input, shape index: {}]   ;;  %s2602_s10 = inlined_call_operand.vmem [shape: f32[4,16,8], index: 10, kind: output, shape index: {}]  }
   0x1 LB: > { %s2011_s14 = sadd.s32 4294967295, %s2282_s13   ;;  %p2015_p0 = scmp.ge.s32.totalorder %s2282_s13, 1  ;;  %s2282_s13 = sphi %s2345_s13, %s20_s13  }
   0x2   : > { %p325_p1 = scmp.lt.s32.totalorder %s2282_s13, 3 }
   0x4   : > { %p326_p2 = pnand %p2015_p0, %p325_p1 }
   0x5   : > { %s2016_s15 = sshll.u32 (!%p326_p2), %s2011_s14, 1  ;;  %vm401_vm0 = vcmask (!%p326_p2), 64512   ;;  %v2382_v22 = vld [vmem:[%s2596_s4] sm:$0xff] (!%p326_p2)  ;;  %v2284_v25 = vmov (!%p326_p2), 0.0|0.0   ;;  %v395_v37 = vld [vmem:[%s2598_s6 + $0x8] sm:$0xff] (!%p326_p2)  ;;  %vm2285_vm1 = vmmov (!%p326_p2), 0  }
   0x6   : > { %329 = sbr.rel (%p326_p2) target bundleno = 2483 (0x9b3), region = 60  ;;  %p371_p3 = scmp.lt.s32.totalorder (!%p326_p2), %s2016_s15, 3  ;;  %2120 = vmatprep.subr.mxu1 (!%p326_p2), %v2382_v22  ;;  %v2392_v31 = vld [vmem:[%s2594_s2] ss:$0 sm:$0xff] (!%p326_p2)  ;;  %v2286_v43 = vmov (!%p326_p2), 0.0   ;;  %vm551_vm2 = vcmask (!%p326_p2), 130048  }
   0x7   : > { %2121 = vmatpush3.msra.mxu1 (!%p326_p2), %v2382_v22  ;;  %v2397_v35 = vld [vmem:[%s2595_s3] ss:$0 sm:$0xff] (!%p326_p2)  ;;  %s2287_s30 = smov (!%p326_p2), 120   ;;  %s2288_s21 = smov (!%p326_p2), 112  }
   0x8   : > { %2204 = vmatprep.subr.bf16.mxu1 (!%p326_p2), %v2284_v25  ;;  %v394_v36 = vld [vmem:[%s2598_s6] sm:$0xff] (!%p326_p2) }
   0x9   : > { %v2410_v42 = vpack.c.bf16 (!%p326_p2), %v395_v37, %v394_v36  ;;  %v2427_v45 = vld [vmem:[%s2597_s5] ss:$0 sm:$0xff] (!%p326_p2) }
   0xa   : > { %v2434_v50 = vld [vmem:[%s2599_s7] ss:$0 sm:$0xff] (!%p326_p2) }
   0xd   : > { %s2604_s15 = smov (!%p371_p3, %s2016_s15), 3 }
   0xe   : > { %s2070_s16 = sshll.u32 %s2604_s15, 4 }
   0xf   : > { %s2361_s19 = scalar_lea.vmem %s2592_s0, %s2070_s16 }
  0x10   : > { %v2364_v0 = vld [vmem:[%s2361_s19] sm:$0xff]  ;;  %v2367_v1 = vld [vmem:[%s2361_s19 + $0x8] sm:$0xff]  ;;  %v2450_v54 = vld [vmem:[%s2361_s19 + $0x10] sm:$0xff] }
  0x11   : > { %v402_v2 = vsel %vm401_vm0, %v2364_v0, 0.0  ;;  %v403_v3 = vsel %vm401_vm0, %v2367_v1, 0.0  ;;  %v414_v4 = vmul.f32 %v2364_v0, %v2364_v0  ;;  %v415_v5 = vmul.f32 %v2367_v1, %v2367_v1  ;;  %v2453_v55 = vld [vmem:[%s2361_s19 + $0x18] sm:$0xff] }
  0x12   : > { %v404_v6 = vadd.f32 %v403_v3, %v402_v2  ;;  %v1189_v56 = vsel %vm401_vm0, %v2450_v54, 0.0  ;;  %v1190_v57 = vsel %vm401_vm0, %v2453_v55, 0.0  ;;  %v1201_v59 = vmul.f32 %v2450_v54, %v2450_v54 }
  0x13   : > { %v416_v7 = vsel %vm401_vm0, %v414_v4, 0.0  ;;  %v417_v8 = vsel %vm401_vm0, %v415_v5, 0.0  ;;  %v1191_v58 = vadd.f32 %v1190_v57, %v1189_v56  ;;  %v1202_v60 = vmul.f32 %v2453_v55, %v2453_v55 }
  0x14   : > { %405 = vadd.xlane.f32.xlu0 %v404_v6  ;;  %v418_v9 = vadd.f32 %v417_v8, %v416_v7  ;;  %v1203_v61 = vsel %vm401_vm0, %v1201_v59, 0.0 }
  0x15   : > { %v1204_v62 = vsel %vm401_vm0, %v1202_v60, 0.0 }
  0x16   : > { %v1205_v63 = vadd.f32 %v1204_v62, %v1203_v61 }
  0x18   : > { %419 = vadd.xlane.f32.xlu0 %v418_v9 }
  0xa1   : > { %v406_v10 = vpop.xlane.xlu0 %405 }
  0xa2   : > { %v407_v11 = vrot.slane %v406_v10, 4 }
  0xa4   : > { %v408_v12 = vadd.f32 %v407_v11, %v406_v10 }
  0xa5   : > { %v420_v13 = vpop.xlane.xlu0 %419 }
  0xa6   : > { %v409_v14 = vrot.slane %v408_v12, 2  ;;  %v421_v15 = vrot.slane %v420_v13, 4 }
  0xa8   : > { %v422_v16 = vadd.f32 %v421_v15, %v420_v13  ;;  %v410_v17 = vadd.f32 %v409_v14, %v408_v12 }
  0xaa   : > { %v423_v18 = vrot.slane %v422_v16, 2  ;;  %v411_v19 = vrot.slane %v410_v17, 1 }
  0xac   : > { %v412_v20 = vadd.f32 %v411_v19, %v410_v17  ;;  %v424_v21 = vadd.f32 %v423_v18, %v422_v16 }
  0xae   : > { %2214 = vpush %v412_v20  ;;  %v425_v23 = vrot.slane %v424_v21, 1 }
  0xb0   : > { %v426_v24 = vadd.f32 %v425_v23, %v424_v21 }
  0xb2   : > { %2216 = vpush %v426_v24 }
  0xdf   : > { %s2215_s22 = spop %2214 }
  0xe0   : > { %s428_s23 = smul.f32 0.0078125, %s2215_s22  ;;  %s2020_s22 = sshll.u32 %s2604_s15, 3 }
  0xe2   : > { %s430_s24 = smul.f32 %s428_s23, %s428_s23  ;;  %v436_v28 = vstv %s428_s23 }
  0xe3   : > { %s2217_s25 = spop %2216  ;;  %v437_v29 = vsub.f32 %v2364_v0, %v436_v28  ;;  %v438_v30 = vsub.f32 %v2367_v1, %v436_v28 }
  0xe4   : > { %s429_s26 = smul.f32 0.0078125, %s2217_s25  ;;  %s2415_s25 = scalar_lea.vmem %s2593_s1, %s2020_s22 }
  0xe5   : > { %v400_v44 = vld [vmem:[%s2415_s25] sm:$0xff]  ;;  %s2289_s22 = smov 104  }
  0xe6   : > { %s431_s27 = ssub.f32 %s429_s26, %s430_s24 }
  0xe8   : > { %s432_s28 = sadd.f32 1e-05, %s431_s27 }
  0xea   : > { %v433_v26 = vstv %s432_s28 }
  0xeb   : > { %2240 = vrsqrt.f32 %v433_v26 }
  0xf5   : > { %v2241_v27 = vpop.eup %2240 }
  0xf6   : > { %2218 = vpush %v2241_v27 }
 0x127   : > { %s2219_s29 = spop %2218 }
 0x128   : > { %v439_v32 = vstv %s2219_s29 }
 0x129   : > { %v440_v33 = vmul.f32 %v439_v32, %v437_v29  ;;  %v441_v34 = vmul.f32 %v439_v32, %v438_v30 }
 0x12b   : > { %v449_v38 = vmul.f32 %v2392_v31, %v441_v34  ;;  %v448_v39 = vmul.f32 %v2392_v31, %v440_v33 }
 0x12d   : > { %v457_v40 = vadd.f32 %v2397_v35, %v449_v38  ;;  %v456_v41 = vadd.f32 %v2397_v35, %v448_v39 }
 0x12f   : > { %2122 = vmatprep.mubr.msk.f32.mxu1 %vm401_vm0, %v456_v41 }
 0x130   : > { %2123 = vmatmul.mubr.msk.f32.vlgmr.msra.gmra.mrb[0].mxu1 %vm401_vm0, %v457_v40 }
 0x131   : > { %2206 = vmatpush3.bf16.msra.mxu1 %v2410_v42  ;;  %2129 = vmatprep.mubr.msk.f32.mxu1 %vm2285_vm1, %v2286_v43 }
 0x134   : > { %2130 = vmatmul.mubr.msk.f32.vlgmr.msra.gmra.mrb[2].mxu1 %vm551_vm2, %v400_v44 }
 0x203   : > { %v2124_v46 = vpop.f32.mrb[0].mxu1 }
 0x204   : > { %v542_v47 = vadd.f32 %v2124_v46, %v2427_v45  ;;  %v536_v48 = vpop.f32.mrb[1].mxu1 }
 0x205   : > { %v537_v49 = vadd.f32 %v2427_v45, %v536_v48 }
 0x206   : > { %818 = vrot.lane.b32.xlu0 %v542_v47, %s2287_s30 }
 0x207   : > { %v621_v51 = vpop.f32.mrb[2].mxu1  ;;  %2134 = vmatprep.mubr.msk.f32.mxu0 %vm401_vm0, %v537_v49 }
 0x208   : > { %v2439_v52 = vadd.f32 %v2434_v50, %v621_v51  ;;  %v2131_v53 = vpop.f32.mrb[3].mxu1 }
 0x20a   : > { %820 = vrot.lane.b32.xlu1 %v2439_v52, %s2287_s30  ;;  %2132 = vmatprep.subr.msk.mxu0 %vm401_vm0, %v2439_v52 }
 0x20b   : > { %2133 = vmatpush3.xpose.msk.msra.mxu0 %vm401_vm0, %v2439_v52 }
 0x20e   : > { %816 = vrot.lane.b32.xlu1 %v537_v49, %s2287_s30  ;;  %2135 = vmatmul.mubr.msk.f32.vlgmr.msra.gmra.mrb[0].mxu0 %vm401_vm0, %v542_v47 }
 0x225   : > { %1206 = vadd.xlane.f32.xlu0 %v1205_v63 }
 0x232   : > { %1192 = vadd.xlane.f32.xlu1 %v1191_v58 }
 0x278   : > { %v819_v4 = vpop.permute.xlu0 %818 }
 0x27c   : > { %v821_v2 = vpop.permute.xlu1 %820 }
 0x27d   : > { %2142 = vmatprep.subr.msk.mxu0 %vm401_vm0, %v821_v2 }
 0x27e   : > { %2143 = vmatpush3.xpose.msk.msra.mxu0 %vm401_vm0, %v821_v2 }
 0x280   : > { %v817_v3 = vpop.permute.xlu1 %816 }
 0x281   : > { %2144 = vmatprep.mubr.msk.f32.mxu0 %vm401_vm0, %v817_v3 }
 0x282   : > { %2145 = vmatmul.mubr.msk.f32.vlgmr.msra.gmra.mrb[2].mxu0 %vm401_vm0, %v819_v4 }
 0x2b2   : > { %v1207_v13 = vpop.xlane.xlu0 %1206 }
 0x2b3   : > { %v1208_v15 = vrot.slane %v1207_v13, 4 }
 0x2b5   : > { %v1209_v17 = vadd.f32 %v1208_v15, %v1207_v13 }
 0x2b7   : > { %v1210_v19 = vrot.slane %v1209_v17, 2 }
 0x2b9   : > { %v1211_v20 = vadd.f32 %v1210_v19, %v1209_v17 }
 0x2bb   : > { %v1212_v21 = vrot.slane %v1211_v20, 1 }
 0x2bd   : > { %v1213_v23 = vadd.f32 %v1212_v21, %v1211_v20 }
 0x2bf   : > { %v1193_v9 = vpop.xlane.xlu1 %1192 }
 0x2c0   : > { %v1194_v10 = vrot.slane %v1193_v9, 4 }
 0x2c2   : > { %v1195_v11 = vadd.f32 %v1194_v10, %v1193_v9 }
 0x2c4   : > { %v1196_v12 = vrot.slane %v1195_v11, 2 }
 0x2c6   : > { %v1197_v14 = vadd.f32 %v1196_v12, %v1195_v11 }
 0x2c8   : > { %v1198_v16 = vrot.slane %v1197_v14, 1 }
 0x2ca   : > { %v1199_v18 = vadd.f32 %v1198_v16, %v1197_v14 }
 0x2cc   : > { %2220 = vpush %v1199_v18 }
 0x2cd   : > { %2222 = vpush %v1213_v23 }
 0x2e1   : > { %v2136_v5 = vpop.f32.mrb[0].mxu0 }
 0x2e2   : > { %v700_v6 = vpop.f32.mrb[1].mxu0  ;;  %v712_v7 = vsel %vm401_vm0, %v2136_v5, -inf }
 0x2e3   : > { %713 = vmax.xlane.f32.xlu1 %v712_v7  ;;  %v709_v8 = vsel %vm401_vm0, %v700_v6, -inf }
 0x2e7   : > { %710 = vmax.xlane.f32.xlu1 %v709_v8 }
 0x2fd   : > { %s2221_s19 = spop %2220 }
 0x2fe   : > { %s2471_s11 = smul.f32 0.0078125, %s2221_s19  ;;  %s2223_s14 = spop %2222 }
 0x2ff   : > { %s1216_s17 = smul.f32 0.0078125, %s2223_s14 }
 0x300   : > { %s1217_s12 = smul.f32 %s2471_s11, %s2471_s11  ;;  %v1223_v4 = vstv %s2471_s11  ;;  %s2551_s11 = scalar_lea.vmem %s2602_s10, %s2070_s16 }
 0x301   : > { %v1224_v8 = vsub.f32 %v2450_v54, %v1223_v4  ;;  %v1225_v9 = vsub.f32 %v2453_v55, %v1223_v4 }
 0x302   : > { %s1218_s18 = ssub.f32 %s1216_s17, %s1217_s12 }
 0x304   : > { %s1219_s20 = sadd.f32 1e-05, %s1218_s18 }
 0x306   : > { %v1220_v24 = vstv %s1219_s20 }
 0x307   : > { %2242 = vrsqrt.f32 %v1220_v24 }
 0x311   : > { %v2243_v26 = vpop.eup %2242 }
 0x312   : > { %2224 = vpush %v2243_v26 }
 0x343   : > { %s2225_s23 = spop %2224 }
 0x355   : > { %v2146_v27 = vpop.f32.mrb[2].mxu0 }
 0x356   : > { %v894_v28 = vpop.f32.mrb[3].mxu0  ;;  %v906_v30 = vsel %vm401_vm0, %v2146_v27, -inf }
 0x357   : > { %v903_v29 = vsel %vm401_vm0, %v894_v28, -inf }
 0x358   : > { %904 = vmax.xlane.f32.xlu1 %v903_v29 }
 0x35c   : > { %907 = vmax.xlane.f32.xlu1 %v906_v30 }
 0x370   : > { %v714_v32 = vpop.xlane.xlu1 %713 }
 0x371   : > { %v716_v33 = vsub.f32 %v2136_v5, %v714_v32 }
 0x373   : > { %v719_v34 = vmul.f32 1.442695, %v716_v33  ;;  %v2543_v33 = vld [vmem:[%s2601_s9] ss:$0 sm:$0xff] }
 0x374   : > { %v711_v36 = vpop.xlane.xlu1 %710 }
 0x375   : > { %2244 = vpow2.f32 %v719_v34  ;;  %v715_v37 = vsub.f32 %v700_v6, %v711_v36 }
 0x377   : > { %v717_v38 = vmul.f32 1.442695, %v715_v37 }
 0x379   : > { %2246 = vpow2.f32 %v717_v38 }
 0x37f   : > { %v2245_v39 = vpop.eup %2244 }
 0x380   : > { %v724_v40 = vsel %vm401_vm0, %v2245_v39, 0.0 }
 0x381   : > { %725 = vadd.xlane.f32.xlu0 %v724_v40 }
 0x383   : > { %v2247_v41 = vpop.eup %2246 }
 0x384   : > { %v721_v44 = vsel %vm401_vm0, %v2247_v41, 0.0 }
 0x385   : > { %722 = vadd.xlane.f32.xlu1 %v721_v44 }
 0x3e5   : > { %v905_v46 = vpop.xlane.xlu1 %904 }
 0x3e6   : > { %v909_v47 = vsub.f32 %v894_v28, %v905_v46 }
 0x3e8   : > { %v911_v48 = vmul.f32 1.442695, %v909_v47 }
 0x3e9   : > { %v908_v49 = vpop.xlane.xlu1 %907 }
 0x3ea   : > { %2248 = vpow2.f32 %v911_v48  ;;  %v910_v51 = vsub.f32 %v2146_v27, %v908_v49 }
 0x3ec   : > { %v913_v53 = vmul.f32 1.442695, %v910_v51 }
 0x3ee   : > { %2250 = vpow2.f32 %v913_v53 }
 0x3f4   : > { %v2249_v56 = vpop.eup %2248 }
 0x3f5   : > { %v915_v57 = vsel %vm401_vm0, %v2249_v56, 0.0 }
 0x3f6   : > { %916 = vadd.xlane.f32.xlu1 %v915_v57 }
 0x3f8   : > { %v2251_v58 = vpop.eup %2250 }
 0x3f9   : > { %v918_v59 = vsel %vm401_vm0, %v2251_v58, 0.0 }
 0x3fa   : > { %919 = vadd.xlane.f32.xlu0 %v918_v59 }
 0x407   : > { %731 = vrot.lane.b32.xlu1 %v2439_v52, %s2288_s21 }
 0x40e   : > { %v726_v63 = vpop.xlane.xlu0 %725 }
 0x410   : > { %925 = vrot.lane.b32.xlu0 %v2439_v52, %s2289_s22  ;;  %v1226_v52 = vstv %s2225_s23 }
 0x411   : > { %v1227_v11 = vmul.f32 %v1226_v52, %v1224_v8  ;;  %v1228_v13 = vmul.f32 %v1226_v52, %v1225_v9 }
 0x412   : > { %v723_v60 = vpop.xlane.xlu1 %722 }
 0x413   : > { %2252 = vrcp.f32 %v723_v60  ;;  %v1229_v15 = vmul.f32 %v2392_v31, %v1227_v11  ;;  %v1230_v17 = vmul.f32 %v2392_v31, %v1228_v13  ;;  %v2048_v31 = vld [vmem:[%s2415_s25 + $0x8] sm:$0xff] }
 0x414   : > { %2254 = vrcp.f32 %v726_v63 }
 0x415   : > { %v1231_v19 = vadd.f32 %v2397_v35, %v1229_v15  ;;  %v1232_v20 = vadd.f32 %v2397_v35, %v1230_v17 }
 0x41d   : > { %v2253_v61 = vpop.eup %2252 }
 0x41e   : > { %v729_v62 = vmul.f32 %v2253_v61, %v2247_v41  ;;  %v2255_v3 = vpop.eup %2254 }
 0x41f   : > { %v730_v7 = vmul.f32 %v2255_v3, %v2245_v39 }
 0x420   : > { %2139 = vmatprep.mubr.msk.f32.mxu1 %vm401_vm0, %v729_v62 }
 0x483   : > { %v917_v2 = vpop.xlane.xlu1 %916 }
 0x484   : > { %2256 = vrcp.f32 %v917_v2 }
 0x487   : > { %v920_v5 = vpop.xlane.xlu0 %919  ;;  %v732_v6 = vpop.permute.xlu1 %731 }
 0x488   : > { %2258 = vrcp.f32 %v920_v5  ;;  %2137 = vmatprep.subr.mxu1 %v732_v6 }
 0x489   : > { %2138 = vmatpush3.msra.mxu1 %v732_v6 }
 0x48a   : > { %2140 = vmatmul.mubr.msk.f32.vlgmr.msra.gmra.mrb[4].mxu1 %vm401_vm0, %v730_v7 }
 0x48b   : > { %v926_v10 = vpop.permute.xlu0 %925 }
 0x48c   : > { %2147 = vmatprep.subr.mxu1 %v926_v10 }
 0x48d   : > { %2148 = vmatpush3.msra.mxu1 %v926_v10 }
 0x48e   : > { %v2257_v12 = vpop.eup %2256  ;;  %2162 = vmatprep.subr.mxu1 %v2382_v22 }
 0x48f   : > { %v923_v14 = vmul.f32 %v2257_v12, %v2249_v56 }
 0x491   : > { %2149 = vmatprep.mubr.msk.f32.mxu1 %vm401_vm0, %v923_v14 }
 0x492   : > { %v2259_v16 = vpop.eup %2258 }
 0x493   : > { %v924_v18 = vmul.f32 %v2259_v16, %v2251_v58 }
 0x495   : > { %2150 = vmatmul.mubr.msk.f32.vlgmr.msra.gmra.mrb[6].mxu1 %vm401_vm0, %v924_v18 }
 0x496   : > { %2163 = vmatpush3.msra.mxu1 %v2382_v22  ;;  %2164 = vmatprep.mubr.msk.f32.mxu1 %vm401_vm0, %v1231_v19  ;;  %v1009_v22 = vld [vmem:[%s2600_s8 + $0x8] sm:$0xff] }
 0x497   : > { %2207 = vmatprep.subr.bf16.mxu1 %v2284_v25  ;;  %2152 = vmatprep.subr.mxu0 %v1009_v22  ;;  %v2512_v25 = vld [vmem:[%s2600_s8] sm:$0xff] }
 0x498   : > { %2153 = vmatpush3.msra.mxu0 %v1009_v22 }
 0x499   : > { %2165 = vmatmul.mubr.msk.f32.vlgmr.msra.gmra.mrb[8].mxu1 %vm401_vm0, %v1232_v20  ;;  %2157 = vmatprep.subr.mxu0 %v2512_v25 }
 0x49a   : > { %2209 = vmatpush3.bf16.msra.mxu1 %v2410_v42  ;;  %2171 = vmatprep.mubr.msk.f32.mxu1 %vm2285_vm1, %v2286_v43 }
 0x49d   : > { %2172 = vmatmul.mubr.msk.f32.vlgmr.msra.gmra.mrb[10].mxu1 %vm551_vm2, %v2048_v31 }
 0x55d   : > { %v2141_v35 = vpop.f32.mrb[4].mxu1 }
 0x55e   : > { %v806_v42 = vpop.f32.mrb[5].mxu1 }
 0x568   : > { %v2151_v21 = vpop.f32.mrb[6].mxu1 }
 0x569   : > { %v1000_v43 = vpop.f32.mrb[7].mxu1 }
 0x56a   : > { %2154 = vmatprep.mubr.msk.f32.mxu0 %vm401_vm0, %v1000_v43 }
 0x56b   : > { %2155 = vmatmul.mubr.msk.f32.vlgmr.msra.gmra.mrb[4].mxu0 %vm401_vm0, %v2151_v21 }
 0x56c   : > { %2159 = vmatprep.mubr.msk.f32.mxu0 %vm401_vm0, %v806_v42  ;;  %v2166_v23 = vpop.f32.mrb[8].mxu1  ;;  %2158 = vmatpush3.msra.mxu0 %v2512_v25 }
 0x56d   : > { %v1311_v24 = vadd.f32 %v2166_v23, %v2427_v45  ;;  %v1305_v26 = vpop.f32.mrb[9].mxu1 }
 0x56e   : > { %v1306_v30 = vadd.f32 %v2427_v45, %v1305_v26 }
 0x56f   : > { %1580 = vrot.lane.b32.xlu0 %v1311_v24, %s2287_s30 }
 0x570   : > { %v1383_v27 = vpop.f32.mrb[10].mxu1 }
 0x571   : > { %v2522_v28 = vadd.f32 %v2434_v50, %v1383_v27  ;;  %v2173_v29 = vpop.f32.mrb[11].mxu1 }
 0x573   : > { %1582 = vrot.lane.b32.xlu1 %v2522_v28, %s2287_s30  ;;  %2160 = vmatmul.mubr.msk.f32.vlgmr.msra.gmra.mrb[4].mxu0 %vm401_vm0, %v2141_v35 }
 0x574   : > { %2174 = vmatprep.subr.msk.mxu0 %vm401_vm0, %v2522_v28  ;;  %2176 = vmatprep.mubr.msk.f32.mxu0 %vm401_vm0, %v1306_v30 }
 0x575   : > { %2175 = vmatpush3.xpose.msk.msra.mxu0 %vm401_vm0, %v2522_v28 }
 0x577   : > { %1578 = vrot.lane.b32.xlu1 %v1306_v30, %s2287_s30 }
 0x578   : > { %2177 = vmatmul.mubr.msk.f32.vlgmr.msra.gmra.mrb[6].mxu0 %vm401_vm0, %v1311_v24 }
 0x5e1   : > { %v1581_v32 = vpop.permute.xlu0 %1580 }
 0x5e5   : > { %v1583_v50 = vpop.permute.xlu1 %1582 }
 0x5e6   : > { %2184 = vmatprep.subr.msk.mxu0 %vm401_vm0, %v1583_v50 }
 0x5e7   : > { %2185 = vmatpush3.xpose.msk.msra.mxu0 %vm401_vm0, %v1583_v50 }
 0x5e8   : > { %2194 = vmatprep.subr.mxu0 %v1009_v22 }
 0x5e9   : > { %v1579_v45 = vpop.permute.xlu1 %1578 }
 0x5ea   : > { %2186 = vmatprep.mubr.msk.f32.mxu0 %vm401_vm0, %v1579_v45 }
 0x5eb   : > { %2187 = vmatmul.mubr.msk.f32.vlgmr.msra.gmra.mrb[8].mxu0 %vm401_vm0, %v1581_v32 }
 0x5ec   : > { %2195 = vmatpush3.msra.mxu0 %v1009_v22 }
 0x5ed   : > { %2199 = vmatprep.subr.mxu0 %v2512_v25 }
 0x646   : > { %v2161_v34 = vpop.f32.mrb[4].mxu0 }
 0x647   : > { %v1173_v36 = vadd.f32 %v2161_v34, %v2367_v1  ;;  %v1163_v37 = vpop.f32.mrb[5].mxu0 }
 0x648   : > { %v1172_v38 = vadd.f32 %v1163_v37, %v2364_v0 }
 0x649   : > { %v1181_v39 = vadd.f32 %v2543_v33, %v1173_v36 }
 0x64a   : > { %v1180_v40 = vadd.f32 %v2543_v33, %v1172_v38 }
 0x64b   : > { %1183 = vst.msk [vmem:[%s2551_s11 + $0x8] sm:$0xff] %vm401_vm0, %v1181_v39  ;;  %v2178_v41 = vpop.f32.mrb[6].mxu0 }
 0x64c   : > { %1182 = vst.msk [vmem:[%s2551_s11] sm:$0xff] %vm401_vm0, %v1180_v40  ;;  %v1462_v1 = vpop.f32.mrb[7].mxu0  ;;  %v1474_v44 = vsel %vm401_vm0, %v2178_v41, -inf }
 0x64d   : > { %1475 = vmax.xlane.f32.xlu0 %v1474_v44  ;;  %v1471_v46 = vsel %vm401_vm0, %v1462_v1, -inf }
 0x64e   : > { %1472 = vmax.xlane.f32.xlu1 %v1471_v46 }
 0x6be   : > { %v2188_v47 = vpop.f32.mrb[8].mxu0 }
 0x6bf   : > { %v1656_v48 = vpop.f32.mrb[9].mxu0  ;;  %v1668_v0 = vsel %vm401_vm0, %v2188_v47, -inf }
 0x6c0   : > { %1669 = vmax.xlane.f32.xlu1 %v1668_v0  ;;  %v1665_v49 = vsel %vm401_vm0, %v1656_v48, -inf }
 0x6c1   : > { %1666 = vmax.xlane.f32.xlu0 %v1665_v49 }
 0x6da   : > { %v1476_v51 = vpop.xlane.xlu0 %1475 }
 0x6db   : > { %v1478_v53 = vsub.f32 %v2178_v41, %v1476_v51  ;;  %v1473_v56 = vpop.xlane.xlu1 %1472 }
 0x6dc   : > { %v1477_v57 = vsub.f32 %v1462_v1, %v1473_v56 }
 0x6dd   : > { %v1481_v58 = vmul.f32 1.442695, %v1478_v53 }
 0x6de   : > { %v1479_v59 = vmul.f32 1.442695, %v1477_v57 }
 0x6df   : > { %2260 = vpow2.f32 %v1481_v58 }
 0x6e0   : > { %2262 = vpow2.f32 %v1479_v59 }
 0x6e9   : > { %v2261_v60 = vpop.eup %2260 }
 0x6ea   : > { %v2263_v61 = vpop.eup %2262  ;;  %v1486_v62 = vsel %vm401_vm0, %v2261_v60, 0.0 }
 0x6eb   : > { %1487 = vadd.xlane.f32.xlu1 %v1486_v62  ;;  %v1483_v63 = vsel %vm401_vm0, %v2263_v61, 0.0 }
 0x6ec   : > { %1484 = vadd.xlane.f32.xlu0 %v1483_v63 }
 0x74d   : > { %v1670_v2 = vpop.xlane.xlu1 %1669 }
 0x74e   : > { %v1672_v3 = vsub.f32 %v2188_v47, %v1670_v2  ;;  %v1667_v4 = vpop.xlane.xlu0 %1666 }
 0x74f   : > { %v1671_v5 = vsub.f32 %v1656_v48, %v1667_v4 }
 0x750   : > { %v1675_v6 = vmul.f32 1.442695, %v1672_v3 }
 0x751   : > { %v1673_v7 = vmul.f32 1.442695, %v1671_v5 }
 0x752   : > { %2264 = vpow2.f32 %v1675_v6 }
 0x753   : > { %2266 = vpow2.f32 %v1673_v7 }
 0x75c   : > { %v2265_v8 = vpop.eup %2264 }
 0x75d   : > { %v2267_v52 = vpop.eup %2266  ;;  %v1680_v9 = vsel %vm401_vm0, %v2265_v8, 0.0 }
 0x75e   : > { %1681 = vadd.xlane.f32.xlu1 %v1680_v9  ;;  %v1677_v10 = vsel %vm401_vm0, %v2267_v52, 0.0 }
 0x75f   : > { %1678 = vadd.xlane.f32.xlu0 %v1677_v10 }
 0x76f   : > { %1687 = vrot.lane.b32.xlu1 %v2522_v28, %s2289_s22 }
 0x775   : > { %1493 = vrot.lane.b32.xlu0 %v2522_v28, %s2288_s21 }
 0x778   : > { %v1488_v14 = vpop.xlane.xlu1 %1487 }
 0x779   : > { %v1485_v11 = vpop.xlane.xlu0 %1484 }
 0x77a   : > { %2268 = vrcp.f32 %v1485_v11 }
 0x77b   : > { %2270 = vrcp.f32 %v1488_v14 }
 0x784   : > { %v2269_v12 = vpop.eup %2268 }
 0x785   : > { %v1491_v13 = vmul.f32 %v2269_v12, %v2263_v61  ;;  %v2271_v17 = vpop.eup %2270 }
 0x786   : > { %v1492_v19 = vmul.f32 %v2271_v17, %v2261_v60 }
 0x787   : > { %2181 = vmatprep.mubr.msk.f32.mxu1 %vm401_vm0, %v1491_v13 }
 0x7eb   : > { %v1682_v15 = vpop.xlane.xlu1 %1681 }
 0x7ec   : > { %2272 = vrcp.f32 %v1682_v15  ;;  %v1679_v16 = vpop.xlane.xlu0 %1678 }
 0x7ed   : > { %2274 = vrcp.f32 %v1679_v16 }
 0x7ef   : > { %v1688_v20 = vpop.permute.xlu1 %1687 }
 0x7f0   : > { %v1494_v18 = vpop.permute.xlu0 %1493 }
 0x7f1   : > { %2179 = vmatprep.subr.mxu1 %v1494_v18 }
 0x7f2   : > { %2180 = vmatpush3.msra.mxu1 %v1494_v18 }
 0x7f3   : > { %2182 = vmatmul.mubr.msk.f32.vlgmr.msra.gmra.mrb[12].mxu1 %vm401_vm0, %v1492_v19  ;;  %2189 = vmatprep.subr.mxu1 %v1688_v20 }
 0x7f4   : > { %2190 = vmatpush3.msra.mxu1 %v1688_v20 }
 0x7f6   : > { %v2273_v31 = vpop.eup %2272 }
 0x7f7   : > { %v2275_v22 = vpop.eup %2274  ;;  %v1686_v42 = vmul.f32 %v2273_v31, %v2265_v8 }
 0x7f8   : > { %v1685_v35 = vmul.f32 %v2275_v22, %v2267_v52 }
 0x7fa   : > { %2191 = vmatprep.mubr.msk.f32.mxu1 %vm401_vm0, %v1685_v35 }
 0x7fb   : > { %2192 = vmatmul.mubr.msk.f32.vlgmr.msra.gmra.mrb[14].mxu1 %vm401_vm0, %v1686_v42 }
 0x8c6   : > { %v2183_v21 = vpop.f32.mrb[12].mxu1 }
 0x8c7   : > { %v1568_v43 = vpop.f32.mrb[13].mxu1 }
 0x8ce   : > { %v2193_v23 = vpop.f32.mrb[14].mxu1 }
 0x8cf   : > { %v1762_v24 = vpop.f32.mrb[15].mxu1 }
 0x8d0   : > { %2196 = vmatprep.mubr.msk.f32.mxu0 %vm401_vm0, %v1762_v24 }
 0x8d1   : > { %2197 = vmatmul.mubr.msk.f32.vlgmr.msra.gmra.mrb[10].mxu0 %vm401_vm0, %v2193_v23 }
 0x8d2   : > { %2200 = vmatpush3.msra.mxu0 %v2512_v25  ;;  %2201 = vmatprep.mubr.msk.f32.mxu0 %vm401_vm0, %v1568_v43 }
 0x8d9   : > { %2202 = vmatmul.mubr.msk.f32.vlgmr.msra.gmra.mrb[10].mxu0 %vm401_vm0, %v2183_v21 }
 0x9ac   : > { %v2203_v26 = vpop.f32.mrb[10].mxu0 }
 0x9ad   : > { %v1935_v27 = vadd.f32 %v2203_v26, %v2453_v55  ;;  %v1925_v28 = vpop.f32.mrb[11].mxu0 }
 0x9ae   : > { %v1934_v29 = vadd.f32 %v2450_v54, %v1925_v28 }
 0x9af   : > { %v1937_v30 = vadd.f32 %v2543_v33, %v1935_v27 }
 0x9b0   : > { %v1936_v50 = vadd.f32 %v2543_v33, %v1934_v29 }
 0x9b1   : > { %2067 = vst.msk [vmem:[%s2551_s11 + $0x18] sm:$0xff] %vm401_vm0, %v1937_v30 }
 0x9b2   : > { %2066 = vst.msk [vmem:[%s2551_s11 + $0x10] sm:$0xff] %vm401_vm0, %v1936_v50 }
 0x9b3 PF: > { %s20_s13 = sadd.s32 1, %s2282_s13  }
 0x9b4   : > { %p17_p4 = scmp.ge.s32.totalorder %s20_s13, 4  }
 0x9b6   :  { %19 = sbr.rel (!%p17_p4) target bundleno = 1 (0x1), region = 96 }

</bundles_post_ra>
